<compile_context>
chip_gen: v6e
topology: v6e:2x2x1
jax: 0.10.0
libtpu: 0.0.40
codegen_flags: <defaults>
</compile_context>

<pallas_src>
import functools
import math

import jax
import jax.numpy as jnp
from jax.experimental import pallas as pl
from jax.experimental.pallas import tpu as pltpu

EMB_LN_EPS = 1e-12    # Embedding LayerNorm eps (module spec)
LAYER_LN_EPS = 1e-5   # nn.LayerNorm default eps in the encoder layers
_VMEM_LIMIT = 32 * 1024 * 1024


def _gelu_tanh(x):
    c = math.sqrt(2.0 / math.pi)
    return 0.5 * x * (1.0 + jnp.tanh(c * (x + 0.044715 * x * x * x)))


def _layernorm(x, gamma, beta, eps):
    # Two-pass (centered) variance: avoids the E[x^2]-mean^2 cancellation issue.
    mean = jnp.mean(x, axis=-1, keepdims=True)
    xc = x - mean
    var = jnp.mean(xc * xc, axis=-1, keepdims=True)
    inv = jax.lax.rsqrt(var + eps)
    return xc * (inv * gamma) + beta


def _row_block(s):
    for d in (256, 128, 64, 32, 16, 8):
        if s % d == 0:
            return d
    raise ValueError("sequence length must be a multiple of 8 for this kernel")


def _tile(dim, pref, step=128):
    """Largest multiple of `step` <= pref that divides dim (or dim itself)."""
    if dim <= pref:
        return dim
    t = pref - (pref % step) if pref % step else pref
    while t >= step:
        if dim % t == 0:
            return t
        t -= step
    return dim  # awkward dim: fall back to the full extent (still legal blocking)


# ----------------------------------------------------------------------------
# Embedding: resident-table VMEM gather + positional add + LayerNorm
# ----------------------------------------------------------------------------
def embedding_kernel(ids_ref, tab_ref, pos_ref, g_ref, b_ref, out_ref, *, rows):
    base = pl.program_id(0) * rows
    # In-VMEM gather: one dynamic (1, H) row slice per token (table is resident).
    tok_rows = [tab_ref[pl.ds(ids_ref[base + r], 1), :] for r in range(rows)]
    tok = jnp.concatenate(tok_rows, axis=0).astype(jnp.float32)      # (rows, H)
    x = tok + pos_ref[...].astype(jnp.float32)
    y = _layernorm(x, g_ref[...], b_ref[...], EMB_LN_EPS)
    out_ref[...] = y.astype(out_ref.dtype)


def embedding_forward(ipt_ids, token_table, pos_table, gamma, beta):
    """ipt_ids: [B, S] int32; returns [B*S, H] float32."""
    B, S = ipt_ids.shape
    V, H = token_table.shape
    max_pos = pos_table.shape[0]
    assert S <= max_pos, "sequence length exceeds max_position_embeddings"
    R = _row_block(S)
    n_blocks = (B * S) // R
    s_blocks = S // R

    flat_ids = ipt_ids.reshape(-1).astype(jnp.int32)
    gamma2 = gamma.reshape(1, H).astype(jnp.float32)
    beta2 = beta.reshape(1, H).astype(jnp.float32)

    grid_spec = pltpu.PrefetchScalarGridSpec(
        num_scalar_prefetch=1,
        grid=(n_blocks,),
        in_specs=[
            pl.BlockSpec((V, H), lambda i, ids: (0, 0)),              # resident token table
            pl.BlockSpec((R, H), lambda i, ids: (i % s_blocks, 0)),   # positional rows
            pl.BlockSpec((1, H), lambda i, ids: (0, 0)),              # LN gamma
            pl.BlockSpec((1, H), lambda i, ids: (0, 0)),              # LN beta
        ],
        out_specs=pl.BlockSpec((R, H), lambda i, ids: (i, 0)),
    )
    return pl.pallas_call(
        functools.partial(embedding_kernel, rows=R),
        out_shape=jax.ShapeDtypeStruct((B * S, H), jnp.float32),
        grid_spec=grid_spec,
        compiler_params=pltpu.CompilerParams(
            dimension_semantics=("parallel",),
            vmem_limit_bytes=_VMEM_LIMIT),
    )(flat_ids, token_table, pos_table, gamma2, beta2)


# ----------------------------------------------------------------------------
# Fused LayerNorm + Linear (+ optional GELU): LN needs the full row, so the
# whole K dimension lives in one block (fine for typical hidden sizes).
# ----------------------------------------------------------------------------
def ln_linear_kernel(x_ref, g_ref, bt_ref, w_ref, b_ref, o_ref, *, eps, activation):
    x = x_ref[...].astype(jnp.float32)
    xn = _layernorm(x, g_ref[...], bt_ref[...], eps)
    y = jnp.dot(xn.astype(jnp.bfloat16), w_ref[...],                 # bf16 x bf16 on MXU
                preferred_element_type=jnp.float32) + b_ref[...]
    if activation == "gelu":
        y = _gelu_tanh(y)
    o_ref[...] = y.astype(o_ref.dtype)


def ln_linear_forward(x, gamma, beta, w, b, *, activation="none", eps=LAYER_LN_EPS):
    M, K = x.shape
    Kw, N = w.shape
    assert K == Kw
    tm = _tile(M, 256, 8)
    tn = _tile(N, 256, 128)
    g2 = gamma.reshape(1, K).astype(jnp.float32)
    bt2 = beta.reshape(1, K).astype(jnp.float32)
    b2 = b.reshape(1, N).astype(jnp.float32)
    return pl.pallas_call(
        functools.partial(ln_linear_kernel, eps=eps, activation=activation),
        out_shape=jax.ShapeDtypeStruct((M, N), jnp.float32),
        grid_spec=pltpu.PrefetchScalarGridSpec(
            num_scalar_prefetch=0,
            grid=(M // tm, N // tn),
            in_specs=[
                pl.BlockSpec((tm, K), lambda i, j: (i, 0)),
                pl.BlockSpec((1, K), lambda i, j: (0, 0)),
                pl.BlockSpec((1, K), lambda i, j: (0, 0)),
                pl.BlockSpec((K, tn), lambda i, j: (0, j)),
                pl.BlockSpec((1, tn), lambda i, j: (0, j)),
            ],
            out_specs=pl.BlockSpec((tm, tn), lambda i, j: (i, j)),
        ),
        compiler_params=pltpu.CompilerParams(
            dimension_semantics=("parallel", "parallel"),
            vmem_limit_bytes=_VMEM_LIMIT),
    )(x, g2, bt2, w, b2)


# ----------------------------------------------------------------------------
# Linear + bias + residual add; accumulates directly into the resident output
# block across the K grid axis (no VMEM accumulator scratch).
# ----------------------------------------------------------------------------
def linear_residual_kernel(x_ref, w_ref, b_ref, res_ref, o_ref):
    k = pl.program_id(2)

    @pl.when(k == 0)
    def _():
        o_ref[...] = jnp.zeros_like(o_ref)

    o_ref[...] += jnp.dot(x_ref[...].astype(jnp.bfloat16), w_ref[...],
                          preferred_element_type=jnp.float32)

    @pl.when(k == pl.num_programs(2) - 1)
    def _():
        o_ref[...] = o_ref[...] + b_ref[...] + res_ref[...].astype(jnp.float32)


def linear_residual_forward(x, w, b, residual):
    M, K = x.shape
    Kw, N = w.shape
    assert K == Kw
    tm = _tile(M, 256, 8)
    tn = _tile(N, 256, 128)
    tk = _tile(K, 512, 128)
    b2 = b.reshape(1, N).astype(jnp.float32)
    return pl.pallas_call(
        linear_residual_kernel,
        out_shape=jax.ShapeDtypeStruct((M, N), jnp.float32),
        grid_spec=pltpu.PrefetchScalarGridSpec(
            num_scalar_prefetch=0,
            grid=(M // tm, N // tn, K // tk),
            in_specs=[
                pl.BlockSpec((tm, tk), lambda i, j, k: (i, k)),
                pl.BlockSpec((tk, tn), lambda i, j, k: (k, j)),
                pl.BlockSpec((1, tn), lambda i, j, k: (0, j)),
                pl.BlockSpec((tm, tn), lambda i, j, k: (i, j)),
            ],
            out_specs=pl.BlockSpec((tm, tn), lambda i, j, k: (i, j)),
        ),
        compiler_params=pltpu.CompilerParams(
            dimension_semantics=("parallel", "parallel", "arbitrary"),
            vmem_limit_bytes=_VMEM_LIMIT),
    )(x, w, b2, residual)


# ----------------------------------------------------------------------------
# Attention: one batch element per grid step, all heads processed inside the
# kernel on lane-dense (S, 3H)/(S, H) blocks; heads sliced in-register.
# ----------------------------------------------------------------------------
def attention_kernel(qkv_ref, o_ref, *, num_heads, scale):
    h_dim = o_ref.shape[-1]
    dh = h_dim // num_heads
    qkv = qkv_ref[0]                                                 # (S, 3H) f32
    outs = []
    for h in range(num_heads):                                       # static unroll
        q = qkv[:, h * dh:(h + 1) * dh].astype(jnp.bfloat16)
        k = qkv[:, h_dim + h * dh:h_dim + (h + 1) * dh].astype(jnp.bfloat16)
        v = qkv[:, 2 * h_dim + h * dh:2 * h_dim + (h + 1) * dh].astype(jnp.bfloat16)
        s = jax.lax.dot_general(q, k, (((1,), (1,)), ((), ())),
                                preferred_element_type=jnp.float32) * scale
        m = jnp.max(s, axis=-1, keepdims=True)
        p = jnp.exp(s - m)
        l = jnp.sum(p, axis=-1, keepdims=True)
        a = p * pl.reciprocal(l, approx=True)
        outs.append(jnp.dot(a.astype(jnp.bfloat16), v,
                            preferred_element_type=jnp.float32))
    o_ref[0] = jnp.concatenate(outs, axis=-1).astype(o_ref.dtype)    # lane-dense store


def attention_forward(qkv, num_heads):
    """qkv: (B, S, 3H) -> (B, S, H). mask=None in this module."""
    B, S, H3 = qkv.shape
    H = H3 // 3
    dh = H // num_heads
    scale = 1.0 / math.sqrt(dh)
    return pl.pallas_call(
        functools.partial(attention_kernel, num_heads=num_heads, scale=scale),
        out_shape=jax.ShapeDtypeStruct((B, S, H), jnp.float32),
        grid_spec=pltpu.PrefetchScalarGridSpec(
            num_scalar_prefetch=0,
            grid=(B,),
            in_specs=[pl.BlockSpec((1, S, H3), lambda b: (b, 0, 0))],
            out_specs=pl.BlockSpec((1, S, H), lambda b: (b, 0, 0)),
        ),
        compiler_params=pltpu.CompilerParams(
            dimension_semantics=("parallel",),
            vmem_limit_bytes=_VMEM_LIMIT),
    )(qkv)


# ----------------------------------------------------------------------------
# Full TransformerEncoder forward (inference)
# ----------------------------------------------------------------------------
def transformer_encoder_forward(ipt_ids, params):
    B, S = ipt_ids.shape
    H = params["token_table"].shape[1]
    nh = params["num_heads"]

    x = embedding_forward(ipt_ids, params["token_table"], params["pos_table"],
                          params["emb_ln_g"], params["emb_ln_b"])        # (B*S, H)

    for lp in params["layers"]:
        # x = x + MultiHeadAttention(LayerNorm1(x))    [LN1 fused into QKV matmul]
        qkv = ln_linear_forward(x, lp["ln1_g"], lp["ln1_b"],
                                lp["wqkv"], lp["bqkv"])                  # (B*S, 3H)
        attn = attention_forward(qkv.reshape(B, S, 3 * H), num_heads=nh)  # (B, S, H)
        x = linear_residual_forward(attn.reshape(B * S, H), lp["wo"], lp["bo"], x)
        # x = x + FFN(LayerNorm2(x))                   [LN2 + GELU fused into FFN-1]
        h = ln_linear_forward(x, lp["ln2_g"], lp["ln2_b"],
                              lp["w1"], lp["b1"], activation="gelu")     # (B*S, I)
        x = linear_residual_forward(h, lp["w2"], lp["b2"], x)
    return x.reshape(B, S, H)


# ----------------------------------------------------------------------------
# Pure-JAX reference (mirrors the torch module; per-head q/k/v concatenated)
# ----------------------------------------------------------------------------
def _ln_ref(x, gamma, beta, eps):
    mean = jnp.mean(x, axis=-1, keepdims=True)
    var = jnp.mean((x - mean) ** 2, axis=-1, keepdims=True)
    return (x - mean) / jnp.sqrt(var + eps) * gamma + beta


def reference_forward(ipt_ids, params):
    B, S = ipt_ids.shape
    H = params["token_table"].shape[1]
    nh = params["num_heads"]
    dh = H // nh
    tok = params["token_table"][ipt_ids].astype(jnp.float32)
    pos = params["pos_table"][jnp.arange(S)][None, :, :].astype(jnp.float32)
    x = _ln_ref(tok + pos, params["emb_ln_g"], params["emb_ln_b"], EMB_LN_EPS)
    for lp in params["layers"]:
        y = _ln_ref(x, lp["ln1_g"], lp["ln1_b"], LAYER_LN_EPS)
        qkv = y @ lp["wqkv"].astype(jnp.float32) + lp["bqkv"]
        q, k, v = jnp.split(qkv, 3, axis=-1)

        def heads(t):
            return t.reshape(B, S, nh, dh).transpose(0, 2, 1, 3)

        qh, kh, vh = heads(q), heads(k), heads(v)
        s = jnp.einsum("bhqd,bhkd->bhqk", qh, kh) / math.sqrt(dh)
        a = jax.nn.softmax(s, axis=-1)
        o = jnp.einsum("bhqk,bhkd->bhqd", a, vh).transpose(0, 2, 1, 3).reshape(B, S, H)
        x = x + (o @ lp["wo"].astype(jnp.float32) + lp["bo"])
        y = _ln_ref(x, lp["ln2_g"], lp["ln2_b"], LAYER_LN_EPS)
        hdn = _gelu_tanh(y @ lp["w1"].astype(jnp.float32) + lp["b1"])
        x = x + (hdn @ lp["w2"].astype(jnp.float32) + lp["b2"])
    return x


if __name__ == "__main__":
    # Small shapes consistent with the module structure (hidden a multiple of 128).
    VOCAB, MAX_POS = 512, 64
    HIDDEN, NHEADS, INTER = 256, 8, 128
    NLAYERS = 2
    B, S = 2, 16

    key = jax.random.PRNGKey(0)
    keys = jax.random.split(key, 4 + NLAYERS)

    def dense(k, shape, scale=0.02):
        # Weights stored in bf16 (MXU-native operand dtype).
        return (scale * jax.random.normal(k, shape)).astype(jnp.bfloat16)

    def bias(k, shape, scale=0.02):
        return (scale * jax.random.normal(k, shape)).astype(jnp.float32)

    params = {
        "num_heads": NHEADS,
        # nn.Embedding default init: N(0, 1). LayerNorm: weight=1, bias=0.
        "token_table": jax.random.normal(keys[0], (VOCAB, HIDDEN), dtype=jnp.float32),
        "pos_table": jax.random.normal(keys[1], (MAX_POS, HIDDEN), dtype=jnp.float32),
        "emb_ln_g": jnp.ones((HIDDEN,), jnp.float32),
        "emb_ln_b": jnp.zeros((HIDDEN,), jnp.float32),
        "layers": [],
    }
    for l in range(NLAYERS):
        lk = jax.random.split(keys[4 + l], 8)
        params["layers"].append({
            # Per-head q/k/v Linear weights concatenated along the output dim
            # (equivalent to torch.cat of the per-head AttentionHead outputs).
            "wqkv": dense(lk[0], (HIDDEN, 3 * HIDDEN)),
            "bqkv": bias(lk[1], (3 * HIDDEN,)),
            "wo": dense(lk[2], (HIDDEN, HIDDEN)),
            "bo": bias(lk[3], (HIDDEN,)),
            "w1": dense(lk[4], (HIDDEN, INTER)),
            "b1": bias(lk[5], (INTER,)),
            "w2": dense(lk[6], (INTER, HIDDEN)),
            "b2": bias(lk[7], (HIDDEN,)),
            "ln1_g": jnp.ones((HIDDEN,), jnp.float32),
            "ln1_b": jnp.zeros((HIDDEN,), jnp.float32),
            "ln2_g": jnp.ones((HIDDEN,), jnp.float32),
            "ln2_b": jnp.zeros((HIDDEN,), jnp.float32),
        })

    ipt_ids = jax.random.randint(keys[2], (B, S), 0, VOCAB, dtype=jnp.int32)

    out = transformer_encoder_forward(ipt_ids, params)
    out = jax.block_until_ready(out)

    ref = reference_forward(ipt_ids, params)
    assert out.shape == (B, S, HIDDEN)
    err = float(jnp.max(jnp.abs(out - ref)))
    assert err < 3e-2, f"kernel mismatch vs reference: max abs err = {err}"
    print("KERNEL_OK")
</pallas_src>

<mosaic_0001>
module attributes {stable_mosaic.version = 11 : i64} {
  func.func @embedding_kernel(%arg0: i32, %arg1: memref<32xi32, #tpu.memory_space<smem>>, %arg2: memref<512x256xf32, #tpu.memory_space<vmem>>, %arg3: memref<16x256xf32, #tpu.memory_space<vmem>>, %arg4: memref<1x256xf32, #tpu.memory_space<vmem>>, %arg5: memref<1x256xf32, #tpu.memory_space<vmem>>, %arg6: memref<16x256xf32, #tpu.memory_space<vmem>>) attributes {dimension_semantics = [#tpu.dimension_semantics<parallel>], iteration_bounds = array<i64: 2>, scalar_prefetch = 1 : i64, scratch_operands = 0 : i64, tpu.core_type = #tpu.core_type<tc>, window_params = [{pipeline_mode = #tpu.pipeline_mode<synchronous>, transform_indices = @transform_0, window_bounds = array<i64: 512, 256>}, {transform_indices = @transform_1, window_bounds = array<i64: 16, 256>}, {pipeline_mode = #tpu.pipeline_mode<synchronous>, transform_indices = @transform_2, window_bounds = array<i64: 1, 256>}, {pipeline_mode = #tpu.pipeline_mode<synchronous>, transform_indices = @transform_3, window_bounds = array<i64: 1, 256>}, {transform_indices = @transform_4, window_bounds = array<i64: 16, 256>}]} {
    %c16_i32 = arith.constant 16 : i32
    %0 = arith.muli %arg0, %c16_i32 : i32
    %c0_i32 = arith.constant 0 : i32
    %1 = arith.addi %0, %c0_i32 : i32
    %2 = arith.index_cast %1 : i32 to index
    %3 = memref.load %arg1[%2] : memref<32xi32, #tpu.memory_space<smem>>
    %4 = arith.index_cast %3 : i32 to index
    %c0 = arith.constant 0 : index
    %5 = vector.load %arg2[%4, %c0] : memref<512x256xf32, #tpu.memory_space<vmem>>, vector<1x256xf32>
    %c1_i32 = arith.constant 1 : i32
    %6 = arith.addi %0, %c1_i32 : i32
    %7 = arith.index_cast %6 : i32 to index
    %8 = memref.load %arg1[%7] : memref<32xi32, #tpu.memory_space<smem>>
    %9 = arith.index_cast %8 : i32 to index
    %c0_0 = arith.constant 0 : index
    %10 = vector.load %arg2[%9, %c0_0] : memref<512x256xf32, #tpu.memory_space<vmem>>, vector<1x256xf32>
    %c2_i32 = arith.constant 2 : i32
    %11 = arith.addi %0, %c2_i32 : i32
    %12 = arith.index_cast %11 : i32 to index
    %13 = memref.load %arg1[%12] : memref<32xi32, #tpu.memory_space<smem>>
    %14 = arith.index_cast %13 : i32 to index
    %c0_1 = arith.constant 0 : index
    %15 = vector.load %arg2[%14, %c0_1] : memref<512x256xf32, #tpu.memory_space<vmem>>, vector<1x256xf32>
    %c3_i32 = arith.constant 3 : i32
    %16 = arith.addi %0, %c3_i32 : i32
    %17 = arith.index_cast %16 : i32 to index
    %18 = memref.load %arg1[%17] : memref<32xi32, #tpu.memory_space<smem>>
    %19 = arith.index_cast %18 : i32 to index
    %c0_2 = arith.constant 0 : index
    %20 = vector.load %arg2[%19, %c0_2] : memref<512x256xf32, #tpu.memory_space<vmem>>, vector<1x256xf32>
    %c4_i32 = arith.constant 4 : i32
    %21 = arith.addi %0, %c4_i32 : i32
    %22 = arith.index_cast %21 : i32 to index
    %23 = memref.load %arg1[%22] : memref<32xi32, #tpu.memory_space<smem>>
    %24 = arith.index_cast %23 : i32 to index
    %c0_3 = arith.constant 0 : index
    %25 = vector.load %arg2[%24, %c0_3] : memref<512x256xf32, #tpu.memory_space<vmem>>, vector<1x256xf32>
    %c5_i32 = arith.constant 5 : i32
    %26 = arith.addi %0, %c5_i32 : i32
    %27 = arith.index_cast %26 : i32 to index
    %28 = memref.load %arg1[%27] : memref<32xi32, #tpu.memory_space<smem>>
    %29 = arith.index_cast %28 : i32 to index
    %c0_4 = arith.constant 0 : index
    %30 = vector.load %arg2[%29, %c0_4] : memref<512x256xf32, #tpu.memory_space<vmem>>, vector<1x256xf32>
    %c6_i32 = arith.constant 6 : i32
    %31 = arith.addi %0, %c6_i32 : i32
    %32 = arith.index_cast %31 : i32 to index
    %33 = memref.load %arg1[%32] : memref<32xi32, #tpu.memory_space<smem>>
    %34 = arith.index_cast %33 : i32 to index
    %c0_5 = arith.constant 0 : index
    %35 = vector.load %arg2[%34, %c0_5] : memref<512x256xf32, #tpu.memory_space<vmem>>, vector<1x256xf32>
    %c7_i32 = arith.constant 7 : i32
    %36 = arith.addi %0, %c7_i32 : i32
    %37 = arith.index_cast %36 : i32 to index
    %38 = memref.load %arg1[%37] : memref<32xi32, #tpu.memory_space<smem>>
    %39 = arith.index_cast %38 : i32 to index
    %c0_6 = arith.constant 0 : index
    %40 = vector.load %arg2[%39, %c0_6] : memref<512x256xf32, #tpu.memory_space<vmem>>, vector<1x256xf32>
    %c8_i32 = arith.constant 8 : i32
    %41 = arith.addi %0, %c8_i32 : i32
    %42 = arith.index_cast %41 : i32 to index
    %43 = memref.load %arg1[%42] : memref<32xi32, #tpu.memory_space<smem>>
    %44 = arith.index_cast %43 : i32 to index
    %c0_7 = arith.constant 0 : index
    %45 = vector.load %arg2[%44, %c0_7] : memref<512x256xf32, #tpu.memory_space<vmem>>, vector<1x256xf32>
    %c9_i32 = arith.constant 9 : i32
    %46 = arith.addi %0, %c9_i32 : i32
    %47 = arith.index_cast %46 : i32 to index
    %48 = memref.load %arg1[%47] : memref<32xi32, #tpu.memory_space<smem>>
    %49 = arith.index_cast %48 : i32 to index
    %c0_8 = arith.constant 0 : index
    %50 = vector.load %arg2[%49, %c0_8] : memref<512x256xf32, #tpu.memory_space<vmem>>, vector<1x256xf32>
    %c10_i32 = arith.constant 10 : i32
    %51 = arith.addi %0, %c10_i32 : i32
    %52 = arith.index_cast %51 : i32 to index
    %53 = memref.load %arg1[%52] : memref<32xi32, #tpu.memory_space<smem>>
    %54 = arith.index_cast %53 : i32 to index
    %c0_9 = arith.constant 0 : index
    %55 = vector.load %arg2[%54, %c0_9] : memref<512x256xf32, #tpu.memory_space<vmem>>, vector<1x256xf32>
    %c11_i32 = arith.constant 11 : i32
    %56 = arith.addi %0, %c11_i32 : i32
    %57 = arith.index_cast %56 : i32 to index
    %58 = memref.load %arg1[%57] : memref<32xi32, #tpu.memory_space<smem>>
    %59 = arith.index_cast %58 : i32 to index
    %c0_10 = arith.constant 0 : index
    %60 = vector.load %arg2[%59, %c0_10] : memref<512x256xf32, #tpu.memory_space<vmem>>, vector<1x256xf32>
    %c12_i32 = arith.constant 12 : i32
    %61 = arith.addi %0, %c12_i32 : i32
    %62 = arith.index_cast %61 : i32 to index
    %63 = memref.load %arg1[%62] : memref<32xi32, #tpu.memory_space<smem>>
    %64 = arith.index_cast %63 : i32 to index
    %c0_11 = arith.constant 0 : index
    %65 = vector.load %arg2[%64, %c0_11] : memref<512x256xf32, #tpu.memory_space<vmem>>, vector<1x256xf32>
    %c13_i32 = arith.constant 13 : i32
    %66 = arith.addi %0, %c13_i32 : i32
    %67 = arith.index_cast %66 : i32 to index
    %68 = memref.load %arg1[%67] : memref<32xi32, #tpu.memory_space<smem>>
    %69 = arith.index_cast %68 : i32 to index
    %c0_12 = arith.constant 0 : index
    %70 = vector.load %arg2[%69, %c0_12] : memref<512x256xf32, #tpu.memory_space<vmem>>, vector<1x256xf32>
    %c14_i32 = arith.constant 14 : i32
    %71 = arith.addi %0, %c14_i32 : i32
    %72 = arith.index_cast %71 : i32 to index
    %73 = memref.load %arg1[%72] : memref<32xi32, #tpu.memory_space<smem>>
    %74 = arith.index_cast %73 : i32 to index
    %c0_13 = arith.constant 0 : index
    %75 = vector.load %arg2[%74, %c0_13] : memref<512x256xf32, #tpu.memory_space<vmem>>, vector<1x256xf32>
    %c15_i32 = arith.constant 15 : i32
    %76 = arith.addi %0, %c15_i32 : i32
    %77 = arith.index_cast %76 : i32 to index
    %78 = memref.load %arg1[%77] : memref<32xi32, #tpu.memory_space<smem>>
    %79 = arith.index_cast %78 : i32 to index
    %c0_14 = arith.constant 0 : index
    %80 = vector.load %arg2[%79, %c0_14] : memref<512x256xf32, #tpu.memory_space<vmem>>, vector<1x256xf32>
    %81 = tpu.concatenate %5, %10, %15, %20, %25, %30, %35, %40, %45, %50, %55, %60, %65, %70, %75, %80 in 0 : vector<1x256xf32>, vector<1x256xf32>, vector<1x256xf32>, vector<1x256xf32>, vector<1x256xf32>, vector<1x256xf32>, vector<1x256xf32>, vector<1x256xf32>, vector<1x256xf32>, vector<1x256xf32>, vector<1x256xf32>, vector<1x256xf32>, vector<1x256xf32>, vector<1x256xf32>, vector<1x256xf32>, vector<1x256xf32> -> vector<16x256xf32>
    %c0_15 = arith.constant 0 : index
    %c0_16 = arith.constant 0 : index
    %82 = vector.load %arg3[%c0_15, %c0_16] : memref<16x256xf32, #tpu.memory_space<vmem>>, vector<16x256xf32>
    %83 = arith.addf %81, %82 : vector<16x256xf32>
    %c0_17 = arith.constant 0 : index
    %c0_18 = arith.constant 0 : index
    %84 = vector.load %arg4[%c0_17, %c0_18] : memref<1x256xf32, #tpu.memory_space<vmem>>, vector<1x256xf32>
    %c0_19 = arith.constant 0 : index
    %c0_20 = arith.constant 0 : index
    %85 = vector.load %arg5[%c0_19, %c0_20] : memref<1x256xf32, #tpu.memory_space<vmem>>, vector<1x256xf32>
    %cst = arith.constant dense<0.000000e+00> : vector<16xf32>
    %86 = vector.multi_reduction <add>, %83, %cst [1] : vector<16x256xf32> to vector<16xf32>
    %87 = vector.shape_cast %86 : vector<16xf32> to vector<16x1xf32>
    %cst_21 = arith.constant 2.560000e+02 : f32
    %88 = vector.broadcast %cst_21 : f32 to vector<16x1xf32>
    %89 = arith.divf %87, %88 : vector<16x1xf32>
    %90 = vector.broadcast %89 : vector<16x1xf32> to vector<16x256xf32>
    %91 = arith.subf %83, %90 : vector<16x256xf32>
    %92 = arith.mulf %91, %91 : vector<16x256xf32>
    %cst_22 = arith.constant dense<0.000000e+00> : vector<16xf32>
    %93 = vector.multi_reduction <add>, %92, %cst_22 [1] : vector<16x256xf32> to vector<16xf32>
    %94 = vector.shape_cast %93 : vector<16xf32> to vector<16x1xf32>
    %cst_23 = arith.constant 2.560000e+02 : f32
    %95 = vector.broadcast %cst_23 : f32 to vector<16x1xf32>
    %96 = arith.divf %94, %95 : vector<16x1xf32>
    %cst_24 = arith.constant 9.99999996E-13 : f32
    %97 = vector.broadcast %cst_24 : f32 to vector<16x1xf32>
    %98 = arith.addf %96, %97 : vector<16x1xf32>
    %99 = math.rsqrt %98 : vector<16x1xf32>
    %100 = vector.broadcast %99 : vector<16x1xf32> to vector<16x256xf32>
    %101 = vector.broadcast %84 : vector<1x256xf32> to vector<16x256xf32>
    %102 = arith.mulf %100, %101 : vector<16x256xf32>
    %103 = arith.mulf %91, %102 : vector<16x256xf32>
    %104 = vector.broadcast %85 : vector<1x256xf32> to vector<16x256xf32>
    %105 = arith.addf %103, %104 : vector<16x256xf32>
    %c0_25 = arith.constant 0 : index
    %c0_26 = arith.constant 0 : index
    %106 = vector.load %arg6[%c0_25, %c0_26] : memref<16x256xf32, #tpu.memory_space<vmem>>, vector<16x256xf32>
    tpu.vector_store %arg6[%c0_25, %c0_26], %105 {strides = array<i32>} : memref<16x256xf32, #tpu.memory_space<vmem>>, vector<16x256xf32>,
    return
  }
  func.func @transform_0(%arg0: i32, %arg1: memref<32xi32, #tpu.memory_space<smem>>) -> (i32, i32) {
    %c0_i32 = arith.constant 0 : i32
    %c0_i32_0 = arith.constant 0 : i32
    %c0_i32_1 = arith.constant 0 : i32
    return %c0_i32, %c0_i32_0 : i32, i32
  }
  func.func @transform_1(%arg0: i32, %arg1: memref<32xi32, #tpu.memory_space<smem>>) -> (i32, i32) {
    %c1_i32 = arith.constant 1 : i32
    %c0_i32 = arith.constant 0 : i32
    %0 = arith.cmpi eq, %c1_i32, %c0_i32 : i32
    %c1_i32_0 = arith.constant 1 : i32
    %1 = arith.select %0, %c1_i32_0, %c1_i32 : i32
    %2 = arith.remsi %arg0, %1 : i32
    %c0_i32_1 = arith.constant 0 : i32
    %3 = arith.cmpi ne, %2, %c0_i32_1 : i32
    %c0_i32_2 = arith.constant 0 : i32
    %4 = arith.cmpi slt, %2, %c0_i32_2 : i32
    %c0_i32_3 = arith.constant 0 : i32
    %5 = arith.cmpi slt, %1, %c0_i32_3 : i32
    %6 = arith.xori %4, %5 : i1
    %7 = arith.andi %6, %3 : i1
    %8 = arith.addi %2, %1 : i32
    %9 = arith.select %7, %8, %2 : i32
    %c0_i32_4 = arith.constant 0 : i32
    %c0_i32_5 = arith.constant 0 : i32
    return %9, %c0_i32_4 : i32, i32
  }
  func.func @transform_2(%arg0: i32, %arg1: memref<32xi32, #tpu.memory_space<smem>>) -> (i32, i32) {
    %c0_i32 = arith.constant 0 : i32
    %c0_i32_0 = arith.constant 0 : i32
    %c0_i32_1 = arith.constant 0 : i32
    return %c0_i32, %c0_i32_0 : i32, i32
  }
  func.func @transform_3(%arg0: i32, %arg1: memref<32xi32, #tpu.memory_space<smem>>) -> (i32, i32) {
    %c0_i32 = arith.constant 0 : i32
    %c0_i32_0 = arith.constant 0 : i32
    %c0_i32_1 = arith.constant 0 : i32
    return %c0_i32, %c0_i32_0 : i32, i32
  }
  func.func @transform_4(%arg0: i32, %arg1: memref<32xi32, #tpu.memory_space<smem>>) -> (i32, i32) {
    %c0_i32 = arith.constant 0 : i32
    %c0_i32_0 = arith.constant 0 : i32
    return %arg0, %c0_i32 : i32, i32
  }
}

</mosaic_0001>

<bundles_post_ra>
// kernel: tpu_custom_call.1
= control target key start
LH: loop header
LB: loop body
LE: loop exit
PB: predicated region body
PF: predicated region fallthrough
CT: control target
= control target key end

     0   :  { %s1077_s18 = smov [#allocation3]   ;;  %s1411_s0 = inlined_call_operand.hbm [shape: s32[32], index: 0, kind: input, shape index: {}]   ;;  %s1412_s1 = inlined_call_operand.hbm [shape: f32[512,256], index: 1, kind: input, shape index: {}]   ;;  %s1413_s2 = inlined_call_operand.hbm [shape: f32[64,256], index: 2, kind: input, shape index: {}]   ;;  %s1414_s3 = inlined_call_operand.vmem [shape: f32[1,256], index: 3, kind: input, shape index: {}]   ;;  %s1415_s4 = inlined_call_operand.vmem [shape: f32[1,256], index: 4, kind: input, shape index: {}]   ;;  %s1416_s5 = inlined_call_operand.hbm [shape: f32[32,256], index: 5, kind: output, shape index: {}]  }
   0x1   :  { %1418 = sst [smem:[#allocation15_spill]] %s1412_s1 }
   0x2   :  { %1419 = sst [smem:[#allocation16_spill]] %s1413_s2 }
   0x3   :  { %11 = dma.hbm_to_smem %s1411_s0, 16, %s1077_s18, [#allocation2] }
   0x4   :  { %1047 = dma.done.wait [#allocation2], 16 }
   0x5   :  { %1048 = vsyncadd [#allocation2], 4294967280 }
   0x6   :  { %13 = sfence }
   0x7   :  { %14 = vsyncpa [#allocation5], 0 }
   0x8   :  { %15 = vsyncpa [#allocation8], 0 }
   0x9   :  { %16 = vsyncpa [#allocation6], 0 }
   0xa   :  { %18 = vsyncpa [#allocation6 + $0x1], 0  ;;  %s1118_s21 = smov 0   ;;  %s1120_s22 = smov 0  }
   0xb   :  { %s1122_s23 = smov 0   ;;  %s1124_s24 = smov 0  }
   0xc LB: > { %s1139_s0 = sadd.s32 4294967295, %s1075_s24   ;;  %s811_s25 = sadd.s32 4294967294, %s1075_s24   ;;  %s1075_s24 = sphi %s1124_s24, %s1437_s24   ;;  %s1071_s23 = sphi %s1122_s23, %s1436_s23   ;;  %s1067_s22 = sphi %s1120_s22, %s1435_s22   ;;  %s1063_s21 = sphi %s1118_s21, %s1434_s21  }
   0xd   : > { %s1143_s26 = sadd.s32 1, %s1075_s24   ;;  %s115_s27 = sadd.s32 1, %s1071_s23 }
   0xe   : > { %s112_s28 = ssub.s32 %s1075_s24, %s1143_s26  ;;  %p125_p0 = scmp.ne.s32.totalorder %s1071_s23, %s1067_s22 }
   0xf   : > { %p113_p1 = scmp.eq.s32.totalorder %s112_s28, 0  ;;  %p126_p2 = scmp.eq.s32.totalorder %s1139_s0, 1 }
  0x10   : > { %p131_p3 = scmp.ne.s32.totalorder %s1067_s22, %s1063_s21  ;;  %p132_p4 = scmp.eq.s32.totalorder %s811_s25, 1 }
  0x11   : > { %s1154_s29 = scalar_select %p113_p1, %s1071_s23, %s115_s27  }
  0x12   : > { %p1156_p5 = por %p126_p2, %p125_p0  ;;  %p1160_p6 = por %p132_p4, %p131_p3 }
  0x13   : > { %1420 = sst [smem:[#allocation14_spill]] %s1154_s29  ;;  %p812_p7 = scmp.ge.s32.totalorder %s1075_s24, 1 }
  0x14   : > { %s1422_s6 = scalar_select %p1160_p6, 1, 0 }
  0x15   : > { %p139_p8 = scmp.lt.s32.totalorder %s1075_s24, 3  ;;  %p1417_p9 = scmp.eq.s32.totalorder %s1139_s0, 0 }
  0x16   : > { %s1078_s8 = smov [#allocation4]   ;;  %s1079_s11 = smov [#allocation7]  }
  0x17   : > { %p1167_p10 = pnand %p812_p7, %p139_p8  ;;  %s151_s9 = sshll.u32 %s1078_s8, 4  ;;  %s152_s9 = int_to_ptr.vmem [resolvable:$true] %s151_s9 }
  0x18   : > { %s164_s12 = sshll.u32 %s1079_s11, 4  ;;  %s964_s13 = scalar_lea.vmem %s152_s9, 16384  ;;  %s165_s12 = int_to_ptr.vmem [resolvable:$true] %s164_s12 }
  0x19   : > { %p886_p11 = pneg %p1167_p10  ;;  %p965_p0 = scmp.ne.s32.totalorder %s152_s9, %s964_s13 }
  0x1a   : > { %p972_p3 = scmp.lt.s32.totalorder %s152_s9, %s152_s9  ;;  %p973_p4 = scmp.lt.s32.totalorder %s964_s13, %s964_s13 }
  0x1b   : > { %p1175_p12 = pnand %p1417_p9, %p886_p11 }
  0x1c   : > { %p974_p7 = por %p973_p4, %p972_p3 }
  0x1d   : > { %p955_p13 = pneg %p1175_p12 }
  0x1f   : > { %p967_p1 = pnand %p965_p0, %p955_p13 }
  0x21   : > { %p968_p2 = pneg %p967_p1 }
  0x23   : > { %p975_p8 = pnand %p974_p7, %p968_p2 }
  0x25   : > { %978 = shalt.err (!%p975_p8)
}
  0x26   : > { %s1080_s14 = smov 256   ;;  %s1081_s15 = smov 16  }
  0x27   : > { %s1425_s1 = sld [smem:[#allocation15_spill]]  ;;  %s990_s18 = scalar_lea.vmem %s165_s12, 512 }
  0x28   : > { %p991_p11 = scmp.ne.s32.totalorder %s165_s12, %s990_s18  ;;  %p998_p9 = scmp.lt.s32.totalorder %s165_s12, %s165_s12 }
  0x29   : > { %p999_p6 = scmp.lt.s32.totalorder %s990_s18, %s990_s18 }
  0x2a   : > { %p993_p0 = pnand %p991_p11, %p955_p13 }
  0x2b   : > { %p1000_p3 = por %p999_p6, %p998_p9 }
  0x2c   : > { %p994_p1 = pneg %p993_p0 }
  0x2d   : > { %889 = dma.hbm_to_vmem [thread:$0]  (!%p1175_p12), %s1425_s1, 16384, %s152_s9, [#allocation5], %s1080_s14, %s1080_s14, %s1081_s15  }
  0x2e   : > { %p1001_p2 = pnand %p1000_p3, %p994_p1 }
  0x30   : > { %1004 = shalt.err (!%p1001_p2)
}
  0x31   : > { %s1426_s2 = sld [smem:[#allocation16_spill]]  ;;  %p1427_p4 = scmp.eq.s32.totalorder (!%p1167_p10), %s1139_s0, 0 }
  0x33   : > { %186 = sbr.rel (%p1167_p10) target bundleno = 451 (0x1c3), region = 36 }
  0x37   : > { %892 = dma.hbm_to_vmem [thread:$0]  (!%p1175_p12), %s1426_s2, 512, %s165_s12, [#allocation8], %s1080_s14, %s1080_s14, %s1081_s15  }
  0x38   : > { %1050 = dma.done.wait (%p1427_p4), [#allocation5], 16384   ;;  %p1428_p13 = pmov %p1427_p4 }
  0x39   : > { %p1429_p7 = pmov %p1427_p4 }
  0x3a   : > { %1052 = vsyncadd (%p1428_p13), [#allocation5], 4294950912 }
  0x3b   : > { %1054 = dma.done.wait (%p1429_p7), [#allocation8], 512   ;;  %p1430_p6 = pmov %p1427_p4 }
  0x3c   : > { %s1208_s25 = sshll.u32 %s1139_s0, 4  ;;  %v389_v0 = vlaneseq  ;;  %vm564_vm0 = vcmask 1040384   ;;  %vm567_vm1 = vcmask 1041408   ;;  %vm570_vm2 = vcmask 1042432   ;;  %v599_v40 = vld [vmem:[#allocation7] sm:$0xff]  ;;  %v600_v41 = vld [vmem:[#allocation7 + $0x8] sm:$0xff] }
  0x3d   : > { %1056 = vsyncadd (%p1430_p6), [#allocation8], 4294966784  ;;  %s213_s27 = sld [smem:[#allocation3 + %s1208_s25]]  ;;  %s223_s28 = sadd.s32 1, %s1208_s25  ;;  %vm573_vm3 = vcmask 1043456   ;;  %vm576_vm4 = vcmask 1044480  }
  0x3e   : > { %s224_s7 = sld [smem:[#allocation3 + %s223_s28]]  ;;  %s234_s8 = sadd.s32 2, %s1208_s25  ;;  %v390_v1 = vshrl.u32 %v389_v0, 7  ;;  %vm579_vm5 = vcmask 1045504   ;;  %vm582_vm6 = vcmask 1046528  }
  0x3f   : > { %s1213_s9 = sld [smem:[#allocation3 + %s234_s8]]  ;;  %s245_s10 = sadd.s32 3, %s1208_s25 }
  0x40   : > { %s1216_s11 = sld [smem:[#allocation3 + %s245_s10]]  ;;  %s256_s12 = sadd.s32 4, %s1208_s25  ;;  %v1226_v2 = vsub.s32 0, %v390_v1  ;;  %v1228_v3 = vsub.s32 1, %v390_v1 }
  0x41   : > { %s1219_s13 = sld [smem:[#allocation3 + %s256_s12]]  ;;  %s267_s14 = sadd.s32 5, %s1208_s25 }
  0x42   : > { %s1222_s15 = sld [smem:[#allocation3 + %s267_s14]] }
  0x43   : > { %s214_s17 = sshra.s32 %s213_s27, 3  ;;  %s217_s18 = sand.u32 7, %s213_s27 }
  0x44   : > { %s858_s19 = sshll.u32 %s214_s17, 4  ;;  %s225_s20 = sshra.s32 %s224_s7, 3 }
  0x45   : > { %s220_s28 = sadd.s32 %s858_s19, %s217_s18  ;;  %s228_s8 = sand.u32 7, %s224_s7 }
  0x46   : > { %s859_s1 = sshll.u32 %s225_s20, 4  ;;  %s236_s2 = sshra.s32 %s1213_s9, 3 }
  0x47   : > { %s231_s10 = sadd.s32 %s859_s1, %s228_s8  ;;  %s221_s12 = scalar_lea.vmem [#allocation4], %s220_s28 }
  0x48   : > { %v222_v4 = vld [vmem:[%s221_s12] ss:$8 sm:$0x3]  ;;  %s239_s14 = sand.u32 7, %s1213_s9  ;;  %s232_s16 = scalar_lea.vmem [#allocation4], %s231_s10 }
  0x49   : > { %v233_v5 = vld [vmem:[%s232_s16] ss:$8 sm:$0x3]  ;;  %s860_s27 = sshll.u32 %s236_s2, 4  ;;  %s247_s17 = sshra.s32 %s1216_s11, 3  ;;  %v392_v6 = vrot.slane %v222_v4, %v1226_v2  ;;  %v396_v7 = vrot.slane %v222_v4, %v1228_v3 }
  0x4a   : > { %s242_s29 = sadd.s32 %s860_s27, %s239_s14  ;;  %s250_s18 = sand.u32 7, %s1216_s11  ;;  %v403_v8 = vrot.slane %v233_v5, %v1226_v2  ;;  %v407_v9 = vrot.slane %v233_v5, %v1228_v3 }
  0x4b   : > { %s861_s7 = sshll.u32 %s247_s17, 4  ;;  %s243_s1 = scalar_lea.vmem [#allocation4], %s242_s29 }
  0x4c   : > { %v244_v10 = vld [vmem:[%s243_s1] ss:$8 sm:$0x3]  ;;  %s253_s9 = sadd.s32 %s861_s7, %s250_s18  ;;  %s258_s19 = sshra.s32 %s1219_s13, 3  ;;  %v565_v14 = vsel %vm564_vm0, %v392_v6, %v403_v8  ;;  %v566_v15 = vsel %vm564_vm0, %v396_v7, %v407_v9 }
  0x4d   : > { %s261_s2 = sand.u32 7, %s1219_s13  ;;  %s254_s16 = scalar_lea.vmem [#allocation4], %s253_s9  ;;  %v414_v12 = vrot.slane %v244_v10, %v1226_v2  ;;  %v418_v13 = vrot.slane %v244_v10, %v1228_v3 }
  0x4e   : > { %v255_v11 = vld [vmem:[%s254_s16] ss:$8 sm:$0x3]  ;;  %s862_s11 = sshll.u32 %s258_s19, 4  ;;  %s269_s20 = sshra.s32 %s1222_s15, 3 }
  0x4f   : > { %s264_s28 = sadd.s32 %s862_s11, %s261_s2  ;;  %s272_s8 = sand.u32 7, %s1222_s15  ;;  %v425_v17 = vrot.slane %v255_v11, %v1226_v2  ;;  %v429_v18 = vrot.slane %v255_v11, %v1228_v3  ;;  %v568_v19 = vsel %vm567_vm1, %v565_v14, %v414_v12  ;;  %v569_v20 = vsel %vm567_vm1, %v566_v15, %v418_v13 }
  0x50   : > { %s863_s29 = sshll.u32 %s269_s20, 4  ;;  %s265_s13 = scalar_lea.vmem [#allocation4], %s264_s28 }
  0x51   : > { %v266_v16 = vld [vmem:[%s265_s13] ss:$8 sm:$0x3]  ;;  %s275_s10 = sadd.s32 %s863_s29, %s272_s8  ;;  %s1431_s12 = sadd.s32 6, %s1208_s25  ;;  %v571_v24 = vsel %vm570_vm2, %v568_v19, %v425_v17  ;;  %v572_v25 = vsel %vm570_vm2, %v569_v20, %v429_v18 }
  0x52   : > { %s1247_s14 = sld [smem:[#allocation3 + %s1431_s12]]  ;;  %s289_s27 = sadd.s32 7, %s1208_s25  ;;  %v436_v22 = vrot.slane %v266_v16, %v1226_v2  ;;  %v440_v23 = vrot.slane %v266_v16, %v1228_v3 }
  0x53   : > { %s1254_s15 = sld [smem:[#allocation3 + %s289_s27]]  ;;  %s300_s17 = sadd.s32 8, %s1208_s25 }
  0x54   : > { %s276_s18 = scalar_lea.vmem [#allocation4], %s275_s10  ;;  %s1259_s7 = sld [smem:[#allocation3 + %s300_s17]]  ;;  %v574_v28 = vsel %vm573_vm3, %v571_v24, %v436_v22  ;;  %v575_v29 = vsel %vm573_vm3, %v572_v25, %v440_v23  ;;  %v602_v22 = vld [vmem:[#allocation7 + $0x18] sm:$0xff] }
  0x55   : > { %v277_v21 = vld [vmem:[%s276_s18] ss:$8 sm:$0x3]  ;;  %s311_s1 = sadd.s32 9, %s1208_s25  ;;  %s322_s19 = sadd.s32 10, %s1208_s25 }
  0x56   : > { %s1264_s9 = sld [smem:[#allocation3 + %s311_s1]]  ;;  %s333_s16 = sadd.s32 11, %s1208_s25  ;;  %v447_v26 = vrot.slane %v277_v21, %v1226_v2  ;;  %v451_v27 = vrot.slane %v277_v21, %v1228_v3  ;;  %v601_v21 = vld [vmem:[#allocation7 + $0x10] sm:$0xff] }
  0x57   : > { %s1267_s2 = sld [smem:[#allocation3 + %s322_s19]] }
  0x58   : > { %s280_s11 = sshra.s32 %s1247_s14, 3  ;;  %s283_s20 = sand.u32 7, %s1247_s14  ;;  %v577_v31 = vsel %vm576_vm4, %v574_v28, %v447_v26  ;;  %v578_v32 = vsel %vm576_vm4, %v575_v29, %v451_v27 }
  0x59   : > { %s864_s28 = sshll.u32 %s280_s11, 4  ;;  %s1276_s8 = sld [smem:[#allocation3 + %s333_s16]] }
  0x5a   : > { %s286_s29 = sadd.s32 %s864_s28, %s283_s20  ;;  %s291_s13 = sshra.s32 %s1254_s15, 3 }
  0x5b   : > { %s294_s10 = sand.u32 7, %s1254_s15  ;;  %s287_s12 = scalar_lea.vmem [#allocation4], %s286_s29 }
  0x5c   : > { %v288_v30 = vld [vmem:[%s287_s12] ss:$8 sm:$0x3]  ;;  %s865_s14 = sshll.u32 %s291_s13, 4  ;;  %s302_s27 = sshra.s32 %s1259_s7, 3 }
  0x5d   : > { %s297_s17 = sadd.s32 %s865_s14, %s294_s10  ;;  %v458_v33 = vrot.slane %v288_v30, %v1226_v2  ;;  %v462_v34 = vrot.slane %v288_v30, %v1228_v3  ;;  %s305_s18 = sand.u32 7, %s1259_s7 }
  0x5e   : > { %s866_s1 = sshll.u32 %s302_s27, 4  ;;  %s298_s15 = scalar_lea.vmem [#allocation4], %s297_s17 }
  0x5f   : > { %v299_v35 = vld [vmem:[%s298_s15] ss:$8 sm:$0x3]  ;;  %v580_v36 = vsel %vm579_vm5, %v577_v31, %v458_v33  ;;  %v581_v37 = vsel %vm579_vm5, %v578_v32, %v462_v34  ;;  %s308_s19 = sadd.s32 %s866_s1, %s305_s18  ;;  %s313_s16 = sshra.s32 %s1264_s9, 3 }
  0x60   : > { %v469_v38 = vrot.slane %v299_v35, %v1226_v2  ;;  %v473_v39 = vrot.slane %v299_v35, %v1228_v3  ;;  %s316_s11 = sand.u32 7, %s1264_s9  ;;  %s867_s7 = sshll.u32 %s313_s16, 4 }
  0x61   : > { %s324_s20 = sshra.s32 %s1267_s2, 3  ;;  %s319_s28 = sadd.s32 %s867_s7, %s316_s11 }
  0x62   : > { %v583_v42 = vsel %vm582_vm6, %v580_v36, %v469_v38  ;;  %v584_v43 = vsel %vm582_vm6, %v581_v37, %v473_v39  ;;  %s327_s29 = sand.u32 7, %s1267_s2  ;;  %s309_s13 = scalar_lea.vmem [#allocation4], %s308_s19 }
  0x63   : > { %v1296_v44 = vadd.f32 %v599_v40, %v583_v42  ;;  %v1298_v45 = vadd.f32 %v600_v41, %v584_v43  ;;  %v310_v46 = vld [vmem:[%s309_s13] ss:$8 sm:$0x3]  ;;  %s868_s10 = sshll.u32 %s324_s20, 4  ;;  %s320_s12 = scalar_lea.vmem [#allocation4], %s319_s28 }
  0x64   : > { %v321_v47 = vld [vmem:[%s320_s12] ss:$8 sm:$0x3]  ;;  %s330_s9 = sadd.s32 %s868_s10, %s327_s29  ;;  %s335_s14 = sshra.s32 %s1276_s8, 3  ;;  %v480_v50 = vrot.slane %v310_v46, %v1226_v2  ;;  %v484_v51 = vrot.slane %v310_v46, %v1228_v3 }
  0x65   : > { %v609_v48 = vadd.f32 %v1298_v45, %v1296_v44  ;;  %s338_s27 = sand.u32 7, %s1276_s8  ;;  %s869_s17 = sshll.u32 %s335_s14, 4  ;;  %v491_v52 = vrot.slane %v321_v47, %v1226_v2  ;;  %v495_v53 = vrot.slane %v321_v47, %v1228_v3 }
  0x66   : > { %s344_s18 = sadd.s32 12, %s1208_s25  ;;  %s331_s2 = scalar_lea.vmem [#allocation4], %s330_s9 }
  0x67   : > { %610 = vadd.xlane.f32.xlu0 %v609_v48  ;;  %v332_v49 = vld [vmem:[%s331_s2] ss:$8 sm:$0x3]  ;;  %s341_s1 = sadd.s32 %s869_s17, %s338_s27  ;;  %s345_s15 = sld [smem:[#allocation3 + %s344_s18]]  ;;  %v585_v57 = vsel %vm564_vm0, %v480_v50, %v491_v52  ;;  %v586_v58 = vsel %vm564_vm0, %v484_v51, %v495_v53 }
  0x68   : > { %s355_s19 = sadd.s32 13, %s1208_s25  ;;  %s366_s11 = sadd.s32 14, %s1208_s25  ;;  %v502_v55 = vrot.slane %v332_v49, %v1226_v2  ;;  %v506_v56 = vrot.slane %v332_v49, %v1228_v3  ;;  %v608_v48 = vld [vmem:[%s1415_s4] sm:$0x3] }
  0x69   : > { %s356_s16 = sld [smem:[#allocation3 + %s355_s19]]  ;;  %s342_s8 = scalar_lea.vmem [#allocation4], %s341_s1  ;;  %v661_v50 = vrot.slane %v608_v48, %v1226_v2  ;;  %v665_v51 = vrot.slane %v608_v48, %v1228_v3 }
  0x6a   : > { %v343_v54 = vld [vmem:[%s342_s8] ss:$8 sm:$0x3]  ;;  %s1311_s7 = sld [smem:[#allocation3 + %s366_s11]]  ;;  %s377_s20 = sadd.s32 15, %s1208_s25  ;;  %v587_v61 = vsel %vm567_vm1, %v585_v57, %v502_v55  ;;  %v588_v62 = vsel %vm567_vm1, %v586_v58, %v506_v56 }
  0x6b   : > { %s1318_s28 = sld [smem:[#allocation3 + %s377_s20]]  ;;  %v513_v59 = vrot.slane %v343_v54, %v1226_v2  ;;  %v517_v60 = vrot.slane %v343_v54, %v1228_v3 }
  0x6d   : > { %s346_s29 = sshra.s32 %s345_s15, 3  ;;  %s349_s13 = sand.u32 7, %s345_s15  ;;  %v589_v0 = vsel %vm570_vm2, %v587_v61, %v513_v59  ;;  %v590_v1 = vsel %vm570_vm2, %v588_v62, %v517_v60 }
  0x6e   : > { %s870_s10 = sshll.u32 %s346_s29, 4 }
  0x6f   : > { %s352_s25 = sadd.s32 %s870_s10, %s349_s13  ;;  %s357_s12 = sshra.s32 %s356_s16, 3 }
  0x70   : > { %s360_s9 = sand.u32 7, %s356_s16  ;;  %s353_s14 = scalar_lea.vmem [#allocation4], %s352_s25 }
  0x71   : > { %v354_v63 = vld [vmem:[%s353_s14] ss:$8 sm:$0x3]  ;;  %s871_s27 = sshll.u32 %s357_s12, 4  ;;  %s368_s17 = sshra.s32 %s1311_s7, 3 }
  0x72   : > { %s363_s18 = sadd.s32 %s871_s27, %s360_s9  ;;  %s371_s2 = sand.u32 7, %s1311_s7  ;;  %v524_v4 = vrot.slane %v354_v63, %v1226_v2  ;;  %v528_v5 = vrot.slane %v354_v63, %v1228_v3 }
  0x73   : > { %s872_s1 = sshll.u32 %s368_s17, 4  ;;  %s364_s15 = scalar_lea.vmem [#allocation4], %s363_s18 }
  0x74   : > { %v365_v6 = vld [vmem:[%s364_s15] ss:$8 sm:$0x3]  ;;  %s374_s19 = sadd.s32 %s872_s1, %s371_s2  ;;  %s379_s16 = sshra.s32 %s1318_s28, 3  ;;  %v591_v7 = vsel %vm573_vm3, %v589_v0, %v524_v4  ;;  %v592_v8 = vsel %vm573_vm3, %v590_v1, %v528_v5 }
  0x75   : > { %s382_s11 = sand.u32 7, %s1318_s28  ;;  %v535_v9 = vrot.slane %v365_v6, %v1226_v2  ;;  %v539_v10 = vrot.slane %v365_v6, %v1228_v3  ;;  %s375_s8 = scalar_lea.vmem [#allocation4], %s374_s19 }
  0x76   : > { %v376_v11 = vld [vmem:[%s375_s8] ss:$8 sm:$0x3]  ;;  %s873_s7 = sshll.u32 %s379_s16, 4  ;;  %s208_s10 = sand.u32 1, %s1067_s22  }
  0x77   : > { %s385_s20 = sadd.s32 %s873_s7, %s382_s11  ;;  %v546_v12 = vrot.slane %v376_v11, %v1226_v2  ;;  %v550_v13 = vrot.slane %v376_v11, %v1228_v3  ;;  %v593_v14 = vsel %vm576_vm4, %v591_v7, %v535_v9  ;;  %v594_v15 = vsel %vm576_vm4, %v592_v8, %v539_v10  ;;  %s818_s9 = sshll.u32 %s208_s10, 5 }
  0x78   : > { %s386_s29 = scalar_lea.vmem [#allocation4], %s385_s20  ;;  %s210_s14 = scalar_lea.vmem [#allocation9], %s818_s9 }
  0x79   : > { %v387_v16 = vld [vmem:[%s386_s29] ss:$8 sm:$0x3]  ;;  %v595_v17 = vsel %vm579_vm5, %v593_v14, %v546_v12  ;;  %v596_v18 = vsel %vm579_vm5, %v594_v15, %v550_v13  ;;  %s875_s27 = sshll.u32 %s1139_s0, 9  ;;  %s691_s17 = sshll.u32 %s210_s14, 4  ;;  %s1367_s17 = int_to_ptr.vmem [resolvable:$true] %s691_s17 }
  0x7a   : > { %v557_v19 = vrot.slane %v387_v16, %v1226_v2  ;;  %v561_v20 = vrot.slane %v387_v16, %v1228_v3  ;;  %s1365_s1 = scalar_lea.hbm %s1416_s5, %s875_s27  ;;  %s1371_s15 = scalar_lea.sflag [#allocation6], %s208_s10 }
  0x7b   : > { %s1005_s0 = scalar_lea.vmem %s1367_s17, 512  ;;  %s1082_s19 = smov [#allocation9]  }
  0x7c   : > { %v597_v23 = vsel %vm582_vm6, %v595_v17, %v557_v19  ;;  %v598_v24 = vsel %vm582_vm6, %v596_v18, %v561_v20  ;;  %p1006_p9 = scmp.ne.s32.totalorder %s1367_s17, %s1005_s0  ;;  %s1009_s16 = sshll.u32 %s1082_s19, 4  ;;  %s1010_s16 = int_to_ptr.vmem [resolvable:$false] %s1009_s16 }
  0x7d   : > { %v605_v25 = vadd.f32 %v601_v21, %v597_v23  ;;  %v606_v26 = vadd.f32 %v602_v22, %v598_v24  ;;  %s1011_s11 = scalar_lea.vmem %s1010_s16, 1024  ;;  %p1012_p8 = scmp.lt.s32.totalorder %s1367_s17, %s1010_s16 }
  0x7e   : > { %p1007_p10 = pnand %p1006_p9, %p1156_p5  ;;  %p1013_p11 = scmp.lt.s32.totalorder %s1011_s11, %s1005_s0 }
  0x7f   : > { %v612_v27 = vadd.f32 %v606_v26, %v605_v25 }
  0x80   : > { %p1008_p12 = pneg %p1007_p10  ;;  %p1014_p0 = por %p1013_p11, %p1012_p8 }
  0x81   : > { %613 = vadd.xlane.f32.xlu0 %v612_v27 }
  0x82   : > { %p1015_p1 = pnand %p1014_p0, %p1008_p12 }
  0xf0   : > { %v611_v28 = vpop.xlane.xlu0 %610 }
  0xf1   : > { %v616_v29 = vmul.f32 0.00390625, %v611_v28 }
  0xf3   : > { %v618_v30 = vsub.f32 %v1296_v44, %v616_v29  ;;  %v619_v31 = vsub.f32 %v1298_v45, %v616_v29  ;;  %v607_v44 = vld [vmem:[%s1414_s3] sm:$0x3] }
  0xf4   : > { %v642_v45 = vrot.slane %v607_v44, %v1226_v2  ;;  %v646_v47 = vrot.slane %v607_v44, %v1228_v3 }
  0xf5   : > { %v622_v32 = vmul.f32 %v618_v30, %v618_v30  ;;  %v623_v33 = vmul.f32 %v619_v31, %v619_v31 }
  0xf7   : > { %v626_v34 = vadd.f32 %v623_v33, %v622_v32 }
  0xf9   : > { %627 = vadd.xlane.f32.xlu1 %v626_v34 }
 0x10a   : > { %v614_v35 = vpop.xlane.xlu0 %613 }
 0x10b   : > { %v617_v36 = vmul.f32 0.00390625, %v614_v35 }
 0x10d   : > { %v620_v37 = vsub.f32 %v605_v25, %v617_v36  ;;  %v621_v38 = vsub.f32 %v606_v26, %v617_v36 }
 0x10f   : > { %v624_v39 = vmul.f32 %v620_v37, %v620_v37  ;;  %v625_v40 = vmul.f32 %v621_v38, %v621_v38 }
 0x111   : > { %v629_v41 = vadd.f32 %v625_v40, %v624_v39 }
 0x113   : > { %630 = vadd.xlane.f32.xlu1 %v629_v41 }
 0x182   : > { %v628_v42 = vpop.xlane.xlu1 %627 }
 0x183   : > { %v632_v43 = vmul.f32 0.00390625, %v628_v42 }
 0x185   : > { %v634_v46 = vadd.f32 1e-12, %v632_v43 }
 0x187   : > { %941 = vrsqrt.f32 %v634_v46 }
 0x194   : > { %v942_v49 = vpop.eup %941 }
 0x195   : > { %v649_v52 = vmul.f32 %v942_v49, %v642_v45  ;;  %v650_v53 = vmul.f32 %v942_v49, %v646_v47 }
 0x197   : > { %v653_v54 = vmul.f32 %v649_v52, %v618_v30  ;;  %v654_v55 = vmul.f32 %v650_v53, %v619_v31 }
 0x199   : > { %v668_v56 = vadd.f32 %v661_v50, %v653_v54  ;;  %v669_v57 = vadd.f32 %v665_v51, %v654_v55 }
 0x19b   : > { %672 = vst [vmem:[%s210_s14] sm:$0xff] %v668_v56  ;;  %673 = vst [vmem:[%s210_s14 + $0x8] sm:$0xff] %v669_v57 }
 0x19c   : > { %v631_v58 = vpop.xlane.xlu1 %630 }
 0x19d   : > { %v633_v59 = vmul.f32 0.00390625, %v631_v58 }
 0x19f   : > { %v635_v60 = vadd.f32 1e-12, %v633_v59 }
 0x1a1   : > { %943 = vrsqrt.f32 %v635_v60 }
 0x1ae   : > { %v944_v61 = vpop.eup %943 }
 0x1af   : > { %v651_v2 = vmul.f32 %v944_v61, %v642_v45  ;;  %v652_v62 = vmul.f32 %v944_v61, %v646_v47 }
 0x1b1   : > { %v655_v3 = vmul.f32 %v651_v2, %v620_v37  ;;  %v656_v63 = vmul.f32 %v652_v62, %v621_v38 }
 0x1b3   : > { %v670_v0 = vadd.f32 %v661_v50, %v655_v3  ;;  %v671_v1 = vadd.f32 %v665_v51, %v656_v63 }
 0x1b5   : > { %674 = vst [vmem:[%s210_s14 + $0x10] sm:$0xff] %v670_v0  ;;  %675 = vst [vmem:[%s210_s14 + $0x18] sm:$0xff] %v671_v1 }
 0x1b6   : > { %1018 = shalt.err (!%p1015_p1)
}
 0x1b7   : > { %s1019_s8 = scalar_lea.hbm %s1365_s1, 512  ;;  %s1023_s29 = scalar_lea.hbm %s1416_s5, 1024 }
 0x1b8   : > { %p1020_p3 = scmp.ne.s32.totalorder %s1365_s1, %s1019_s8  ;;  %p1024_p13 = scmp.lt.s32.totalorder %s1365_s1, %s1416_s5 }
 0x1b9   : > { %p1025_p7 = scmp.lt.s32.totalorder %s1023_s29, %s1019_s8 }
 0x1ba   : > { %p1021_p2 = pnand %p1020_p3, %p1156_p5 }
 0x1bb   : > { %p1026_p6 = por %p1025_p7, %p1024_p13 }
 0x1bc   : > { %p1022_p4 = pneg %p1021_p2 }
 0x1be   : > { %p1027_p9 = pnand %p1026_p6, %p1022_p4 }
 0x1c0   : > { %1030 = shalt.err (!%p1027_p9)
}
 0x1c1   : > { %s1083_s10 = smov 256   ;;  %s1084_s25 = smov 16  }
 0x1c2   : > { %884 = dma.vmem_to_hbm [thread:$0]  (%p1156_p5), %s1367_s17, 512, %s1365_s1, %s1371_s15, %s1083_s10, %s1083_s10, %s1084_s25  }
 0x1c3 PF: > { %p901_p10 = scmp.ge.s32.totalorder %s1075_s24, 2  ;;  %s706_s12 = sand.u32 1, %s1063_s21  }
 0x1c4   : > { %p1432_p12 = scmp.ne.s32.totalorder %s1422_s6, 0  ;;  %s707_s9 = scalar_lea.sflag [#allocation6], %s706_s12 }
 0x1c6   : > { %p894_p8 = pnand %p901_p10, %p1432_p12 }
 0x1c8   : > { %p895_p11 = pneg %p894_p8 }
 0x1ca   : > { %1058 = dma.done.wait (%p895_p11), %s707_s9, 512  }
 0x1cb   : > { %1060 = vsyncadd (%p895_p11), %s707_s9, 4294966784  ;;  %s1433_s14 = sld [smem:[#allocation14_spill]]  ;;  %p21_p0 = scmp.ge.s32.totalorder %s1143_s26, 4  }
 0x1cc   : > { %s1434_s21 = smov %s1067_s22  ;;  %s1435_s22 = smov %s1071_s23 }
 0x1cd   : > { %s1437_s24 = smov %s1143_s26  ;;  %23 = sbr.rel (!%p21_p0) target bundleno = 12 (0xc), region = 93 }
 0x1d1   : > { %s1436_s23 = smov %s1433_s14 }
 0x1d2   :  { %712 = vsyncpa [#allocation5], 1 }
 0x1d3   :  { %714 = vsyncpa [#allocation5 + $0x1], 1 }
 0x1d4   :  { %715 = vsyncpa [#allocation8], 1 }
 0x1d5   :  { %716 = vsyncpa [#allocation6], 1 }
 0x1d6   :  { %718 = vsyncpa [#allocation6 + $0x1], 1 }

</bundles_post_ra>
